<compile_context>
chip_gen: v7x
topology: tpu7x:2x2x1
jax: 0.10.0
libtpu: 0.0.40
codegen_flags: <defaults>
</compile_context>

<pallas_src>
import functools

import jax
import jax.numpy as jnp
from jax.experimental import pallas as pl
from jax.experimental.pallas import tpu as pltpu

_EPS = 1e-12  # torch.nn.functional.normalize default eps


def _round_up(x, m):
    return (x + m - 1) // m * m


def _pick_tm(M, Kp, Np, itemsize, tm_max, vmem_budget_bytes):
    """Largest row tile (multiple of 16, <= tm_max) fitting the VMEM budget."""
    tm = min(tm_max, _round_up(M, 16))

    def vmem_bytes(t):
        # 2x-buffered x and out tiles + (conservatively 2x) resident weight/bias,
        # accumulator lives in registers / f32 temporaries of similar size.
        x_tile = t * Kp * itemsize
        o_tile = t * Np * itemsize
        w_res = Np * Kp * itemsize
        acc = t * Np * 4
        return 2 * (x_tile + o_tile) + 2 * (w_res + Np * itemsize) + acc

    while tm > 16 and vmem_bytes(tm) > vmem_budget_bytes:
        tm = max(16, (tm // 2) // 16 * 16)
    return tm


def _proj_norm_kernel(x_ref, w_ref, b_ref, o_ref):
    # x_ref: (tm, Kp)  w_ref: (Np, Kp)  b_ref: (1, Np)  o_ref: (tm, Np)
    x = x_ref[...]
    w = w_ref[...]
    # y = x @ W^T + b : contract the K axis of both operands (MXU handles the
    # transposed rhs natively), accumulate in f32 without upcasting operands.
    y = jax.lax.dot_general(
        x, w,
        dimension_numbers=(((1,), (1,)), ((), ())),
        preferred_element_type=jnp.float32,
    )
    y = y + b_ref[...].astype(jnp.float32)

    # F.normalize(y, dim=-1): y / max(||y||, eps) == y * rsqrt(max(||y||^2, eps^2))
    sq = jnp.sum(y * y, axis=-1, keepdims=True)
    r = jax.lax.rsqrt(jnp.maximum(sq, _EPS * _EPS))
    o_ref[...] = (y * r).astype(o_ref.dtype)


@functools.partial(jax.jit, static_argnames=("tm_max",))
def token_projection_head(x, weight, bias, *, tm_max=512):
    """x: [B, S, K], weight: [N, K] (PyTorch nn.Linear layout), bias: [N] -> [B, S, N]."""
    B, S, K = x.shape
    N = weight.shape[0]
    M = B * S

    # Lane-dense last dims.
    Kp = _round_up(K, 128)
    Np = _round_up(N, 128)

    # Row tile: large enough to feed the MXU and amortize per-grid-step
    # overhead, but bounded by a VMEM budget (v7x has only 64 MiB physical).
    tm = _pick_tm(M, Kp, Np, jnp.dtype(x.dtype).itemsize, tm_max,
                  vmem_budget_bytes=48 * 1024 * 1024)
    Mp = _round_up(M, tm)

    x2 = x.reshape(M, K)
    if (Mp, Kp) != (M, K):
        x2 = jnp.pad(x2, ((0, Mp - M), (0, Kp - K)))
    w2 = weight if (Np, Kp) == (N, K) else jnp.pad(weight, ((0, Np - N), (0, Kp - K)))
    b2 = (bias if Np == N else jnp.pad(bias, (0, Np - N))).reshape(1, Np)

    out = pl.pallas_call(
        _proj_norm_kernel,
        out_shape=jax.ShapeDtypeStruct((Mp, Np), x.dtype),
        grid_spec=pltpu.PrefetchScalarGridSpec(
            num_scalar_prefetch=0,
            grid=(Mp // tm,),
            in_specs=[
                pl.BlockSpec((tm, Kp), lambda i: (i, 0)),
                pl.BlockSpec((Np, Kp), lambda i: (0, 0)),   # grid-invariant weight
                pl.BlockSpec((1, Np), lambda i: (0, 0)),    # grid-invariant bias
            ],
            out_specs=pl.BlockSpec((tm, Np), lambda i: (i, 0)),
        ),
        compiler_params=pltpu.CompilerParams(
            dimension_semantics=("parallel",),
            vmem_limit_bytes=64 * 1024 * 1024,
        ),
    )(x2, w2, b2)

    return out[:M, :N].reshape(B, S, N)


def _reference(x, weight, bias):
    y = jnp.einsum("bsk,nk->bsn", x, weight) + bias
    norm = jnp.sqrt(jnp.sum(y * y, axis=-1, keepdims=True))
    return y / jnp.maximum(norm, _EPS)


if __name__ == "__main__":
    # Small shapes consistent with the module's forward: tokens of dim K
    # projected to dim N, then L2-normalized per token.
    B, S, K, N = 2, 8, 32, 16

    key = jax.random.PRNGKey(0)
    kx, kw, kb = jax.random.split(key, 3)

    x = jax.random.normal(kx, (B, S, K), dtype=jnp.float32)
    # Deterministic "Linear" params (synthetic, kaiming-ish scale)
    weight = jax.random.normal(kw, (N, K), dtype=jnp.float32) * (1.0 / jnp.sqrt(K))
    bias = jax.random.normal(kb, (N,), dtype=jnp.float32) * 0.01

    out = jax.block_until_ready(token_projection_head(x, weight, bias))
    ref = _reference(x, weight, bias)

    assert out.shape == (B, S, N)
    assert jnp.allclose(out, ref, atol=2e-5, rtol=2e-5), "mismatch vs reference"

    print("KERNEL_OK")
</pallas_src>

<mosaic_0001>
module attributes {stable_mosaic.version = 11 : i64} {
  func.func @_proj_norm_kernel(%arg0: i32, %arg1: memref<16x128xf32, #tpu.memory_space<vmem>>, %arg2: memref<128x128xf32, #tpu.memory_space<vmem>>, %arg3: memref<1x128xf32, #tpu.memory_space<vmem>>, %arg4: memref<16x128xf32, #tpu.memory_space<vmem>>) attributes {dimension_semantics = [#tpu.dimension_semantics<parallel>], iteration_bounds = array<i64: 1>, scalar_prefetch = 0 : i64, scratch_operands = 0 : i64, tpu.core_type = #tpu.core_type<tc>, window_params = [{transform_indices = @transform_0, window_bounds = array<i64: 16, 128>}, {pipeline_mode = #tpu.pipeline_mode<synchronous>, transform_indices = @transform_1, window_bounds = array<i64: 128, 128>}, {pipeline_mode = #tpu.pipeline_mode<synchronous>, transform_indices = @transform_2, window_bounds = array<i64: 1, 128>}, {transform_indices = @transform_3, window_bounds = array<i64: 16, 128>}]} {
    %c0 = arith.constant 0 : index
    %c0_0 = arith.constant 0 : index
    %0 = vector.load %arg1[%c0, %c0_0] : memref<16x128xf32, #tpu.memory_space<vmem>>, vector<16x128xf32>
    %c0_1 = arith.constant 0 : index
    %c0_2 = arith.constant 0 : index
    %1 = vector.load %arg2[%c0_1, %c0_2] : memref<128x128xf32, #tpu.memory_space<vmem>>, vector<128x128xf32>
    %cst = arith.constant dense<0.000000e+00> : vector<16x128xf32>
    %2 = tpu.matmul %0, %1, %cst {dimension_numbers = #tpu.dot_dimension_numbers<[1], [1], [0], [0], [0, 0, 1, 0], [], []>} : vector<16x128xf32>, vector<128x128xf32>, vector<16x128xf32> -> vector<16x128xf32>
    %c0_3 = arith.constant 0 : index
    %c0_4 = arith.constant 0 : index
    %3 = vector.load %arg3[%c0_3, %c0_4] : memref<1x128xf32, #tpu.memory_space<vmem>>, vector<1x128xf32>
    %4 = vector.broadcast %3 : vector<1x128xf32> to vector<16x128xf32>
    %5 = arith.addf %2, %4 : vector<16x128xf32>
    %6 = arith.mulf %5, %5 : vector<16x128xf32>
    %cst_5 = arith.constant dense<0.000000e+00> : vector<16xf32>
    %7 = vector.multi_reduction <add>, %6, %cst_5 [1] : vector<16x128xf32> to vector<16xf32>
    %8 = vector.shape_cast %7 : vector<16xf32> to vector<16x1xf32>
    %cst_6 = arith.constant 1.000000e-24 : f32
    %9 = vector.broadcast %cst_6 : f32 to vector<16x1xf32>
    %10 = arith.maximumf %8, %9 : vector<16x1xf32>
    %11 = math.rsqrt %10 : vector<16x1xf32>
    %12 = vector.broadcast %11 : vector<16x1xf32> to vector<16x128xf32>
    %13 = arith.mulf %5, %12 : vector<16x128xf32>
    %c0_7 = arith.constant 0 : index
    %c0_8 = arith.constant 0 : index
    %14 = vector.load %arg4[%c0_7, %c0_8] : memref<16x128xf32, #tpu.memory_space<vmem>>, vector<16x128xf32>
    tpu.vector_store %arg4[%c0_7, %c0_8], %13 {strides = array<i32>} : memref<16x128xf32, #tpu.memory_space<vmem>>, vector<16x128xf32>,
    return
  }
  func.func @transform_0(%arg0: i32) -> (i32, i32) {
    %c0_i32 = arith.constant 0 : i32
    %c0_i32_0 = arith.constant 0 : i32
    return %arg0, %c0_i32 : i32, i32
  }
  func.func @transform_1(%arg0: i32) -> (i32, i32) {
    %c0_i32 = arith.constant 0 : i32
    %c0_i32_0 = arith.constant 0 : i32
    %c0_i32_1 = arith.constant 0 : i32
    return %c0_i32, %c0_i32_0 : i32, i32
  }
  func.func @transform_2(%arg0: i32) -> (i32, i32) {
    %c0_i32 = arith.constant 0 : i32
    %c0_i32_0 = arith.constant 0 : i32
    %c0_i32_1 = arith.constant 0 : i32
    return %c0_i32, %c0_i32_0 : i32, i32
  }
  func.func @transform_3(%arg0: i32) -> (i32, i32) {
    %c0_i32 = arith.constant 0 : i32
    %c0_i32_0 = arith.constant 0 : i32
    return %arg0, %c0_i32 : i32, i32
  }
}

</mosaic_0001>

<bundles_post_ra>
// kernel: token_projection_head.1
= control target key start
LH: loop header
LB: loop body
LE: loop exit
PB: predicated region body
PF: predicated region fallthrough
CT: control target
= control target key end

     0   :  { %8 = vsyncpa [#allocation3], 0  ;;  %s466_s0 = inlined_call_operand.hbm [shape: f32[16,128], index: 0, kind: input, shape index: {}]   ;;  %s467_s1 = inlined_call_operand.hbm [shape: f32[128,128], index: 1, kind: input, shape index: {}]   ;;  %s468_s2 = inlined_call_operand.hbm [shape: f32[1,128], index: 2, kind: input, shape index: {}]   ;;  %s469_s3 = inlined_call_operand.hbm [shape: f32[16,128], index: 3, kind: output, shape index: {}]  }
   0x1   :  { %9 = vsyncpa [#allocation6], 0 }
   0x2   :  { %10 = vsyncpa [#allocation4], 0  ;;  %s376_s12 = smov [#allocation5]   ;;  %s377_s14 = smov [#allocation2]  }
   0x3   :  { %s28_s13 = sshll.u32 %s376_s12, 4  ;;  %s16_s15 = sshll.u32 %s377_s14, 4  ;;  %s29_s13 = int_to_ptr.vmem [resolvable:$true] %s28_s13  ;;  %s402_s15 = int_to_ptr.vmem [resolvable:$true] %s16_s15 }
   0x4   :  { %s282_s18 = scalar_lea.hbm %s467_s1, 2048 }
   0x5   :  { %p283_p0 = scmp.ne.s32.totalorder %s467_s1, %s282_s18  ;;  %p286_p1 = scmp.lt.u32.totalorder %s282_s18, %s467_s1 }
   0x7   :  { %p288_p2 = pnand %p286_p1, %p283_p0 }
   0x9   :  { %291 = shalt.err (!%p288_p2)
}
   0xa   :  { %s292_s23 = scalar_lea.vmem %s29_s13, 2048  ;;  %p297_p4 = scmp.lt.s32.totalorder %s29_s13, %s29_s13 }
   0xb   :  { %p293_p3 = scmp.ne.s32.totalorder %s29_s13, %s292_s23  ;;  %p298_p5 = scmp.lt.s32.totalorder %s292_s23, %s292_s23 }
   0xd   :  { %p299_p6 = por %p298_p5, %p297_p4 }
   0xf   :  { %p300_p7 = pnand %p299_p6, %p293_p3 }
  0x11   :  { %303 = shalt.err (!%p300_p7)
}
  0x12   :  { %s378_s24 = smov 128   ;;  %s379_s25 = smov 8  }
  0x13   :  { %34 = dma.hbm_to_vmem [thread:$0]  %s467_s1, 2048, %s29_s13, [#allocation6], %s378_s24, %s378_s24, %s379_s25  }
  0x14   :  { %s304_s30 = scalar_lea.hbm %s466_s0, 256 }
  0x15   :  { %p305_p8 = scmp.ne.s32.totalorder %s466_s0, %s304_s30  ;;  %p308_p9 = scmp.lt.u32.totalorder %s304_s30, %s466_s0 }
  0x17   :  { %p310_p10 = pnand %p308_p9, %p305_p8 }
  0x19   :  { %313 = shalt.err (!%p310_p10)
}
  0x1a   :  { %s314_s8 = scalar_lea.vmem %s402_s15, 256  ;;  %p319_p12 = scmp.lt.s32.totalorder %s402_s15, %s402_s15 }
  0x1b   :  { %p315_p11 = scmp.ne.s32.totalorder %s402_s15, %s314_s8  ;;  %p320_p13 = scmp.lt.s32.totalorder %s314_s8, %s314_s8 }
  0x1d   :  { %p321_p0 = por %p320_p13, %p319_p12 }
  0x1f   :  { %p322_p1 = pnand %p321_p0, %p315_p11 }
  0x21   :  { %325 = shalt.err (!%p322_p1)
}
  0x22   :  { %22 = dma.hbm_to_vmem [thread:$0]  %s466_s0, 256, %s402_s15, [#allocation3], %s378_s24, %s378_s24, %s379_s25  }
  0x23   :  { %s380_s10 = smov [#allocation7]   ;;  %s326_s14 = scalar_lea.hbm %s468_s2, 16 }
  0x24   :  { %s41_s11 = sshll.u32 %s380_s10, 4  ;;  %p327_p2 = scmp.ne.s32.totalorder %s468_s2, %s326_s14  ;;  %s42_s11 = int_to_ptr.vmem [resolvable:$true] %s41_s11 }
  0x25   :  { %p330_p3 = scmp.lt.u32.totalorder %s326_s14, %s468_s2 }
  0x27   :  { %p332_p4 = pnand %p330_p3, %p327_p2 }
  0x29   :  { %335 = shalt.err (!%p332_p4)
}
  0x2a   :  { %s336_s20 = scalar_lea.vmem %s42_s11, 16  ;;  %s340_s0 = scalar_lea.vmem %s42_s11, 32 }
  0x2b   :  { %p337_p5 = scmp.ne.s32.totalorder %s42_s11, %s336_s20  ;;  %p341_p6 = scmp.lt.s32.totalorder %s42_s11, %s42_s11 }
  0x2c   :  { %p342_p7 = scmp.lt.s32.totalorder %s340_s0, %s336_s20 }
  0x2e   :  { %p343_p8 = por %p342_p7, %p341_p6 }
  0x30   :  { %p344_p9 = pnand %p343_p8, %p337_p5 }
  0x32   :  { %347 = shalt.err (!%p344_p9)
}
  0x33   :  { %44 = dma.hbm_to_vmem [thread:$0]  %s468_s2, 16, %s42_s11, [#allocation6]  }
  0x34   :  { %370 = dma.done.wait [#allocation3], 256  }
  0x35   :  { %371 = vsyncadd [#allocation3], 4294967040 }
  0x36   :  { %372 = dma.done.wait [#allocation6], 2064  }
  0x37   :  { %373 = vsyncadd [#allocation6], 4294965232  ;;  %v56_v0 = vld [vmem:[#allocation5] sm:$0xff]  ;;  %v57_v1 = vld [vmem:[#allocation5 + $0x8] sm:$0xff]  ;;  %s381_s2 = smov [#allocation8]  }
  0x38   :  { %v58_v2 = vld [vmem:[#allocation5 + $0x10] sm:$0xff]  ;;  %v240_v3 = vpack.c.bf16 %v57_v1, %v56_v0  ;;  %v59_v4 = vld [vmem:[#allocation5 + $0x18] sm:$0xff]  ;;  %v60_v7 = vld [vmem:[#allocation5 + $0x20] sm:$0xff]  ;;  %s173_s22 = sshll.u32 %s381_s2, 4  ;;  %s174_s22 = int_to_ptr.vmem [resolvable:$true] %s173_s22 }
  0x39   :  { %v244_v5 = vpack.c.bf16 %v59_v4, %v58_v2  ;;  %v54_v6 = vld [vmem:[#allocation2] sm:$0xff]  ;;  %v61_v8 = vld [vmem:[#allocation5 + $0x28] sm:$0xff]  ;;  %v63_v11 = vld [vmem:[#allocation5 + $0x38] sm:$0xff]  ;;  %s348_s23 = scalar_lea.vmem %s174_s22, 256  ;;  %p353_p11 = scmp.lt.s32.totalorder %s174_s22, %s174_s22 }
  0x3a   :  { %241 = vmatprep.subr.bf16.mxu0 %v240_v3  ;;  %237 = vmatprep.mubr.f32.mxu0 %v54_v6  ;;  %v248_v9 = vpack.c.bf16 %v61_v8, %v60_v7  ;;  %v62_v10 = vld [vmem:[#allocation5 + $0x30] sm:$0xff]  ;;  %v64_v13 = vld [vmem:[#allocation5 + $0x40] sm:$0xff]  ;;  %v65_v14 = vld [vmem:[#allocation5 + $0x48] sm:$0xff]  ;;  %p349_p10 = scmp.ne.s32.totalorder %s174_s22, %s348_s23  ;;  %p354_p12 = scmp.lt.s32.totalorder %s348_s23, %s348_s23 }
  0x3b   :  { %243 = vmatpush3.bf16.xpose.msra.mxu0 %v240_v3  ;;  %v252_v12 = vpack.c.bf16 %v63_v11, %v62_v10  ;;  %v256_v15 = vpack.c.bf16 %v65_v14, %v64_v13  ;;  %v66_v16 = vld [vmem:[#allocation5 + $0x50] sm:$0xff]  ;;  %v67_v17 = vld [vmem:[#allocation5 + $0x58] sm:$0xff]  ;;  %v68_v19 = vld [vmem:[#allocation5 + $0x60] sm:$0xff] }
  0x3c   :  { %245 = vmatprep.subr.bf16.mxu0 %v244_v5  ;;  %v260_v18 = vpack.c.bf16 %v67_v17, %v66_v16  ;;  %v69_v20 = vld [vmem:[#allocation5 + $0x68] sm:$0xff]  ;;  %v70_v22 = vld [vmem:[#allocation5 + $0x70] sm:$0xff]  ;;  %v71_v23 = vld [vmem:[#allocation5 + $0x78] sm:$0xff]  ;;  %p355_p13 = por %p354_p12, %p353_p11 }
  0x3d   :  { %v264_v21 = vpack.c.bf16 %v69_v20, %v68_v19  ;;  %v268_v24 = vpack.c.bf16 %v71_v23, %v70_v22  ;;  %v55_v25 = vld [vmem:[#allocation2 + $0x8] sm:$0xff]  ;;  %v186_v26 = vld [vmem:[#allocation7] ss:$0 sm:$0xff] }
  0x3e   :  { %p356_p0 = pnand %p355_p13, %p349_p10 }
  0x43   :  { %247 = vmatpush3.bf16.xpose.msra.mxu0 %v244_v5 }
  0x44   :  { %249 = vmatprep.subr.bf16.mxu0 %v248_v9 }
  0x4b   :  { %251 = vmatpush3.bf16.xpose.msra.mxu0 %v248_v9 }
  0x4c   :  { %253 = vmatprep.subr.bf16.mxu0 %v252_v12 }
  0x53   :  { %255 = vmatpush3.bf16.xpose.msra.mxu0 %v252_v12 }
  0x54   :  { %257 = vmatprep.subr.bf16.mxu0 %v256_v15 }
  0x5b   :  { %259 = vmatpush3.bf16.xpose.msra.mxu0 %v256_v15 }
  0x5c   :  { %261 = vmatprep.subr.bf16.mxu0 %v260_v18 }
  0x63   :  { %263 = vmatpush3.bf16.xpose.msra.mxu0 %v260_v18 }
  0x64   :  { %265 = vmatprep.subr.bf16.mxu0 %v264_v21 }
  0x6b   :  { %267 = vmatpush3.bf16.xpose.msra.mxu0 %v264_v21 }
  0x6c   :  { %269 = vmatprep.subr.bf16.mxu0 %v268_v24 }
  0x73   :  { %271 = vmatpush3.bf16.xpose.msra.mxu0 %v268_v24 }
  0x7a   :  { %238 = vmatmul.mubr.f32.vlgmr.msra.gmra.mrb[0].mxu0 %v55_v25 }
 0x14d   :  { %v239_v27 = vpop.f32.mrb[0].mxu0 }
 0x14e   :  { %v145_v28 = vpop.f32.mrb[1].mxu0  ;;  %v151_v30 = vadd.f32 %v239_v27, %v186_v26 }
 0x14f   :  { %v146_v29 = vadd.f32 %v186_v26, %v145_v28 }
 0x150   :  { %v155_v32 = vmul.f32 %v151_v30, %v151_v30 }
 0x151   :  { %v154_v31 = vmul.f32 %v146_v29, %v146_v29 }
 0x153   :  { %156 = vadd.xlane.f32.xlu0 %v154_v31 }
 0x157   :  { %158 = vadd.xlane.f32.xlu0 %v155_v32 }
 0x1e0   :  { %v157_v33 = vpop.xlane.xlu0 %156 }
 0x1e1   :  { %v160_v34 = vmax.f32 %v157_v33, 1e-24 }
 0x1e3   :  { %278 = vrsqrt.f32 %v160_v34 }
 0x1e4   :  { %v159_v35 = vpop.xlane.xlu0 %158 }
 0x1e5   :  { %v161_v36 = vmax.f32 %v159_v35, 1e-24 }
 0x1e7   :  { %280 = vrsqrt.f32 %v161_v36 }
 0x1ed   :  { %v279_v37 = vpop.eup %278 }
 0x1ee   :  { %v164_v38 = vmul.f32 %v279_v37, %v146_v29 }
 0x1f0   :  { %166 = vst [vmem:[#allocation8] sm:$0xff] %v164_v38 }
 0x1f1   :  { %v281_v39 = vpop.eup %280 }
 0x1f2   :  { %v165_v40 = vmul.f32 %v281_v39, %v151_v30 }
 0x1f4   :  { %167 = vst [vmem:[#allocation8 + $0x8] sm:$0xff] %v165_v40 }
 0x1f5   :  { %359 = shalt.err (!%p356_p0)
}
 0x1f6   :  { %s360_s28 = scalar_lea.hbm %s469_s3, 256 }
 0x1f7   :  { %p361_p1 = scmp.ne.s32.totalorder %s469_s3, %s360_s28  ;;  %p364_p2 = scmp.lt.u32.totalorder %s360_s28, %s469_s3 }
 0x1f9   :  { %p366_p3 = pnand %p364_p2, %p361_p1 }
 0x1fb   :  { %369 = shalt.err (!%p366_p3)
}
 0x1fc   :  { %179 = dma.vmem_to_hbm [thread:$0]  %s174_s22, 256, %s469_s3, [#allocation4], %s378_s24, %s378_s24, %s379_s25  }
 0x1fd   :  { %374 = dma.done.wait [#allocation4], 256  }
 0x1fe   :  { %375 = vsyncadd [#allocation4], 4294967040 }
 0x1ff   :  { %183 = vsyncpa [#allocation3], 1 }
 0x200   :  { %184 = vsyncpa [#allocation6], 1 }
 0x201   :  { %185 = vsyncpa [#allocation4], 1 }

</bundles_post_ra>
